<compile_context>
chip_gen: v7x
topology: tpu7x:2x2x1
jax: 0.10.0
libtpu: 0.0.40
codegen_flags: <defaults>
</compile_context>

<pallas_src>
import warnings

import jax
import jax.numpy as jnp
from jax.experimental import pallas as pl
from jax.experimental.pallas import tpu as pltpu


_SUB = 8          # f32 sublane quantum of a vreg tile
_LANE = 128       # lane quantum of a vreg tile
_TARGET_BLOCK_BYTES = 4 << 20   # ~4 MiB per x block; in+out double-buffered ~16 MiB


def _norm_kernel(x_ref, scale_ref, bias_ref, o_ref):
    # x_ref: (row_blk, lane_blk); scale/bias are (1, lane_blk) or (row_blk, 1)
    # and broadcast.  Two VPU ops per element -> purely HBM-bandwidth bound.
    o_ref[...] = x_ref[...] * scale_ref[...] + bias_ref[...]


def _ceil_to(v, m):
    return -(-v // m) * m


def _vreg_util(rows, lanes):
    """Fraction of an (8, 128) vreg tile carrying useful data for this 2-D view."""
    return (min(rows, _SUB) / _SUB) * (min(lanes, _LANE) / _LANE)


def _pick_tiles(rows, lanes, itemsize):
    """Choose (row_blk, lane_blk) for a lane-dense (rows, lanes) streaming view.

    * Budgets VMEM with the (8, 128) padding included.
    * Prefers the full lane width (one contiguous HBM burst per block, params
      fetched once); tiles the lane axis only when even an 8-row slab would
      exceed the block budget.
    * Guarantees >= 2 blocks whenever (8, 128) alignment allows, so both v7x
      TensorCores get a share of the ("parallel", "parallel") grid.
    """
    if _ceil_to(lanes, _LANE) * _SUB * itemsize <= _TARGET_BLOCK_BYTES:
        lane_blk = lanes                                   # full lane width
    else:
        lane_blk = max(_LANE,
                       (_TARGET_BLOCK_BYTES // (_SUB * itemsize)) // _LANE * _LANE)
    lane_pad = _ceil_to(min(lane_blk, lanes), _LANE)

    rows_cap = max(_SUB,
                   (_TARGET_BLOCK_BYTES // (lane_pad * itemsize)) // _SUB * _SUB)
    row_blk = rows if rows <= rows_cap else rows_cap

    # Megacore (v7x): avoid a single-block grid when we can split cleanly.
    if pl.cdiv(rows, row_blk) * pl.cdiv(lanes, lane_blk) < 2:
        if rows >= 2 * _SUB:
            row_blk = _ceil_to(pl.cdiv(rows, 2), _SUB)
        elif lanes >= 2 * _LANE:
            lane_blk = _ceil_to(pl.cdiv(lanes, 2), _LANE)
    return row_blk, lane_blk


def _normalization_impl(x, mean, stddiv):
    """x: (N, C, H, W); mean, stddiv: (C, 1, 1) -> (x - mean) * stddiv."""
    N, C, H, W = x.shape
    HW = H * W
    itemsize = x.dtype.itemsize

    # Fold to  out = x * scale + bias  in f32 (accurate even for bf16 inputs),
    # casting the tiny parameter arrays to x.dtype exactly once.
    mean_f = mean.reshape(C).astype(jnp.float32)
    std_f = stddiv.reshape(C).astype(jnp.float32)
    scale_c = std_f                        # (C,)
    bias_c = -mean_f * std_f               # (C,)

    # Choose the 2-D view with the better sublane/lane utilisation.
    channel_rows = (C > 1) and (_vreg_util(N * C, HW) > _vreg_util(N, C * HW))

    if channel_rows:
        # Small batch: rows = N*C (>= 8 for typical nets), lanes = H*W.
        R, L = N * C, HW
        x2 = x.reshape(R, L)
        scale = jnp.tile(scale_c, N)[:, None].astype(x.dtype)     # (R, 1)
        bias = jnp.tile(bias_c, N)[:, None].astype(x.dtype)       # (R, 1)
        row_blk, lane_blk = _pick_tiles(R, L, itemsize)
        # Row axis slow, lane axis fast -> the per-row param block index is
        # constant across consecutive grid steps (no param re-DMA).
        grid = (pl.cdiv(R, row_blk), pl.cdiv(L, lane_blk))
        x_spec = pl.BlockSpec((row_blk, lane_blk), lambda i, j: (i, j))
        p_spec = pl.BlockSpec((row_blk, 1), lambda i, j: (i, 0))
        param_pad_bytes = _ceil_to(row_blk, _SUB) * _LANE * itemsize
    else:
        # Full batch: rows = N, lanes = C*H*W, per-lane param row.
        R, L = N, C * HW
        x2 = x.reshape(R, L)
        scale = (jnp.broadcast_to(scale_c[:, None], (C, HW))
                 .reshape(1, L).astype(x.dtype))                   # (1, L)
        bias = (jnp.broadcast_to(bias_c[:, None], (C, HW))
                .reshape(1, L).astype(x.dtype))                    # (1, L)
        row_blk, lane_blk = _pick_tiles(R, L, itemsize)
        # Lane axis slow, row axis fast -> param row stays resident across the
        # fast row steps instead of being re-fetched every step.
        grid = (pl.cdiv(L, lane_blk), pl.cdiv(R, row_blk))
        x_spec = pl.BlockSpec((row_blk, lane_blk), lambda j, i: (i, j))
        p_spec = pl.BlockSpec((1, lane_blk), lambda j, i: (0, j))
        param_pad_bytes = _SUB * _ceil_to(lane_blk, _LANE) * itemsize

    # Scoped-VMEM request: in + out double-buffered x blocks + both params,
    # with ~1.5x headroom, capped at 64 MiB so it is valid on v7x too.
    block_bytes = _ceil_to(row_blk, _SUB) * _ceil_to(lane_blk, _LANE) * itemsize
    vmem_need = 4 * block_bytes + 4 * param_pad_bytes
    vmem_limit = int(min(64 << 20, max(16 << 20, vmem_need + vmem_need // 2)))

    out2 = pl.pallas_call(
        _norm_kernel,
        out_shape=jax.ShapeDtypeStruct((R, L), x.dtype),
        grid=grid,
        in_specs=[x_spec, p_spec, p_spec],
        out_specs=x_spec,
        # Write back into x's HBM buffer (PyTorch forward is in-place).
        input_output_aliases={0: 0},
        compiler_params=pltpu.CompilerParams(
            dimension_semantics=("parallel", "parallel"),
            vmem_limit_bytes=vmem_limit,
        ),
    )(x2, scale, bias)

    return out2.reshape(N, C, H, W)


# Donate x at the jit boundary so input_output_aliases can genuinely reuse x's
# buffer (mirrors x.sub_().mul_()); if the runtime cannot donate it, XLA falls
# back to a copy and the result is still correct.
normalization_pallas = jax.jit(_normalization_impl, donate_argnums=(0,))


if __name__ == "__main__":
    # Donation can emit a harmless "donated buffers were not usable" warning if
    # XLA decides to copy instead; silence only that message.
    warnings.filterwarnings("ignore", message="Some donated buffers were not usable")

    key = jax.random.PRNGKey(0)
    kx, km, ks = jax.random.split(key, 3)

    N, C, H, W = 2, 4, 16, 16
    x = jax.random.normal(kx, (N, C, H, W), dtype=jnp.float32)
    # The module's __init__ leaves mean/stddiv uninitialized; use deterministic
    # synthetic values with the correct (C, 1, 1) shapes.
    mean = jax.random.normal(km, (C, 1, 1), dtype=jnp.float32)
    stddiv = jax.random.uniform(ks, (C, 1, 1), dtype=jnp.float32) + 0.5

    x_shape, x_dtype = x.shape, x.dtype
    # Reference computed (and materialized) BEFORE the call: x is donated.
    ref = jax.block_until_ready((x - mean[None]) * stddiv[None])

    out = normalization_pallas(x, mean, stddiv)
    out = jax.block_until_ready(out)

    assert out.shape == x_shape and out.dtype == x_dtype
    max_err = float(jnp.max(jnp.abs(out - ref)))
    assert jnp.allclose(out, ref, atol=1e-5, rtol=1e-5), max_err

    print("KERNEL_OK")
</pallas_src>

<mosaic_0001>
module attributes {stable_mosaic.version = 11 : i64} {
  func.func @_norm_kernel(%arg0: i32, %arg1: i32, %arg2: memref<8x128xf32, #tpu.memory_space<vmem>>, %arg3: memref<8x1xf32, #tpu.memory_space<vmem>>, %arg4: memref<8x1xf32, #tpu.memory_space<vmem>>, %arg5: memref<8x128xf32, #tpu.memory_space<vmem>>) attributes {dimension_semantics = [#tpu.dimension_semantics<parallel>, #tpu.dimension_semantics<parallel>], iteration_bounds = array<i64: 1, 2>, scalar_prefetch = 0 : i64, scratch_operands = 0 : i64, tpu.core_type = #tpu.core_type<tc>, window_params = [{transform_indices = @transform_0, window_bounds = array<i64: 8, 128>}, {transform_indices = @transform_1, window_bounds = array<i64: 8, 1>}, {transform_indices = @transform_2, window_bounds = array<i64: 8, 1>}, {transform_indices = @transform_3, window_bounds = array<i64: 8, 128>}]} {
    %c0 = arith.constant 0 : index
    %c0_0 = arith.constant 0 : index
    %0 = vector.load %arg2[%c0, %c0_0] : memref<8x128xf32, #tpu.memory_space<vmem>>, vector<8x128xf32>
    %c0_1 = arith.constant 0 : index
    %c0_2 = arith.constant 0 : index
    %1 = vector.load %arg3[%c0_1, %c0_2] : memref<8x1xf32, #tpu.memory_space<vmem>>, vector<8x1xf32>
    %2 = vector.broadcast %1 : vector<8x1xf32> to vector<8x128xf32>
    %3 = arith.mulf %0, %2 : vector<8x128xf32>
    %c0_3 = arith.constant 0 : index
    %c0_4 = arith.constant 0 : index
    %4 = vector.load %arg4[%c0_3, %c0_4] : memref<8x1xf32, #tpu.memory_space<vmem>>, vector<8x1xf32>
    %5 = vector.broadcast %4 : vector<8x1xf32> to vector<8x128xf32>
    %6 = arith.addf %3, %5 : vector<8x128xf32>
    %c0_5 = arith.constant 0 : index
    %c0_6 = arith.constant 0 : index
    %7 = vector.load %arg5[%c0_5, %c0_6] : memref<8x128xf32, #tpu.memory_space<vmem>>, vector<8x128xf32>
    tpu.vector_store %arg5[%c0_5, %c0_6], %6 {strides = array<i32>} : memref<8x128xf32, #tpu.memory_space<vmem>>, vector<8x128xf32>,
    return
  }
  func.func @transform_0(%arg0: i32, %arg1: i32) -> (i32, i32) {
    %c0_i32 = arith.constant 0 : i32
    return %arg0, %arg1 : i32, i32
  }
  func.func @transform_1(%arg0: i32, %arg1: i32) -> (i32, i32) {
    %c0_i32 = arith.constant 0 : i32
    %c0_i32_0 = arith.constant 0 : i32
    return %arg0, %c0_i32 : i32, i32
  }
  func.func @transform_2(%arg0: i32, %arg1: i32) -> (i32, i32) {
    %c0_i32 = arith.constant 0 : i32
    %c0_i32_0 = arith.constant 0 : i32
    return %arg0, %c0_i32 : i32, i32
  }
  func.func @transform_3(%arg0: i32, %arg1: i32) -> (i32, i32) {
    %c0_i32 = arith.constant 0 : i32
    return %arg0, %arg1 : i32, i32
  }
}

</mosaic_0001>

<bundles_post_ra>
// kernel: tile.1
= control target key start
LH: loop header
LB: loop body
LE: loop exit
PB: predicated region body
PF: predicated region fallthrough
CT: control target
= control target key end

     0   :  { %s34_s8 = smov 125   ;;  %vm7_vm0 = vcmask 7168   ;;  %s35_s11 = smov 126   ;;  %s61_s0 = inlined_call_operand.vmem [shape: f32[2,4], index: 0, kind: input, shape index: {}]   ;;  %s62_s1 = inlined_call_operand.vmem [shape: f32[8,1], index: 1, kind: output, shape index: {}]  }
   0x1   :  { %v4_v0 = vld [vmem:[%s61_s0] sm:$0x3]  ;;  %s33_s0 = smov 127  }
   0x2   :  { %5 = vst [vmem:[#allocation0] sm:$0x3] %v4_v0 }
   0x9   :  { %v9_v1 = vld [vmem:[#allocation0] sm:$0x3]  }
   0xa   :  { %v21_v2 = vld [vmem:[#allocation0] sm:$0x3]   ;;  %10 = vrot.lane.b32.xlu0 %v9_v1, %s33_s0 }
   0xb   :  { %22 = vrot.lane.b32.xlu1 %v21_v2, %s34_s8  ;;  %v6_v3 = vld [vmem:[#allocation0] sm:$0x3]  }
   0xc   :  { %v15_v4 = vld [vmem:[#allocation0] sm:$0x3]   ;;  %8 = vst.msk [vmem:[%s62_s1] ss:$4 sm:$0x3] %vm7_vm0, %v6_v3  }
   0xe   :  { %16 = vrot.lane.b32.xlu0 %v15_v4, %s35_s11 }
  0x7c   :  { %v11_v5 = vpop.permute.xlu0 %10  }
  0x7d   :  { %v23_v6 = vpop.permute.xlu1 %22   ;;  %27 = vst.msk [vmem:[%s62_s1 + $0x1] ss:$4 sm:$0x3] %vm7_vm0, %v11_v5  }
  0x7e   :  { %29 = vst.msk [vmem:[%s62_s1 + $0x3] ss:$4 sm:$0x3] %vm7_vm0, %v23_v6  }
  0x80   :  { %v17_v7 = vpop.permute.xlu0 %16  }
  0x81   :  { %28 = vst.msk [vmem:[%s62_s1 + $0x2] ss:$4 sm:$0x3] %vm7_vm0, %v17_v7  }

// kernel: tile.16
= control target key start
LH: loop header
LB: loop body
LE: loop exit
PB: predicated region body
PF: predicated region fallthrough
CT: control target
= control target key end

     0   :  { %s22_s0 = inlined_call_operand.vmem [shape: f32[4], index: 0, kind: input, shape index: {}]   ;;  %s23_s1 = inlined_call_operand.vmem [shape: f32[2,4], index: 1, kind: output, shape index: {}]  }
   0x1   :  { %v4_v0 = vld [vmem:[%s22_s0] ss:$0 sm:$0xff] }
   0x2   :  { %5 = vst [vmem:[%s23_s1] sm:$0x3] %v4_v0 }

// kernel: _normalization_impl.1
= control target key start
LH: loop header
LB: loop body
LE: loop exit
PB: predicated region body
PF: predicated region fallthrough
CT: control target
= control target key end

     0   :  { %s448_s12 = smov 0   ;;  %s450_s13 = smov 0   ;;  %s480_s0 = inlined_call_operand.vmem [shape: f32[8,256], index: 0, kind: input, shape index: {}, may-alias: {0,3}]   ;;  %s481_s1 = inlined_call_operand.vmem [shape: f32[8,1], index: 1, kind: input, shape index: {}]   ;;  %s482_s2 = inlined_call_operand.vmem [shape: f32[8,1], index: 2, kind: input, shape index: {}]   ;;  %s483_s3 = inlined_call_operand.vmem [shape: f32[8,256], index: 3, kind: output, shape index: {}, may-alias: {0,3}]  }
   0x1   :  { %s452_s14 = smov 0  }
   0x2 LB: > { %s22_s15 = sadd.s32 1, %s421_s13  ;;  %p372_p0 = scmp.ge.s32.totalorder %s425_s14, 1  ;;  %s425_s14 = sphi %s452_s14, %s13_s14   ;;  %s421_s13 = sphi %s450_s13, %s485_s13   ;;  %s417_s12 = sphi %s448_s12, %s484_s12  }
   0x3   : > { %p23_p1 = scmp.ge.s32.totalorder %s22_s15, 2  ;;  %p174_p2 = scmp.lt.s32.totalorder %s425_s14, 3 }
   0x5   : > { %s487_s15 = smov (%p23_p1, %s22_s15), 0  ;;  %p175_p3 = pnand %p372_p0, %p174_p2 }
   0x6   : > { %v237_v0 = vld [vmem:[%s481_s1] sm:$0xff] (!%p175_p3)  ;;  %v427_v1 = vmov (!%p175_p3), 0   ;;  %p214_p4 = scmp.lt.s32.totalorder (!%p175_p3), %s417_s12, 1 }
   0x7   : > { %178 = sbr.rel (%p175_p3) target bundleno = 143 (0x8f), region = 32  ;;  %402 = vset.pattern.permute.xlu0 (!%p175_p3), %v427_v1  ;;  %v244_v2 = vld [vmem:[%s482_s2] sm:$0xff] (!%p175_p3) }
   0x8   : > { %240 = vperm.xlu0 (!%p175_p3), %402, %v237_v0  }
   0xc   : > { %247 = vperm.xlu0 (!%p175_p3), %402, %v244_v2  }
   0xe   : > { %s489_s12 = smov (!%p214_p4, %s417_s12), 1 }
   0xf   : > { %s373_s20 = sshll.u32 %s489_s12, 3 }
  0x10   : > { %s219_s23 = scalar_lea.vmem %s480_s0, %s373_s20  ;;  %s235_s26 = scalar_lea.vmem %s483_s3, %s373_s20 }
  0x11   : > { %v236_v4 = vld [vmem:[%s219_s23] sm:$0xff] }
  0x87   : > { %v241_v3 = vpop.permute.xlu0 %240 }
  0x88   : > { %v243_v5 = vmul.f32 %v241_v3, %v236_v4 }
  0x8b   : > { %v248_v6 = vpop.permute.xlu0 %247 }
  0x8c   : > { %v250_v7 = vadd.f32 %v248_v6, %v243_v5 }
  0x8e   : > { %251 = vst [vmem:[%s235_s26] sm:$0xff] %v250_v7 }
  0x8f PF: > { %s13_s14 = sadd.s32 1, %s425_s14   ;;  %s484_s12 = smov %s421_s13 }
  0x90   : > { %p10_p5 = scmp.ge.s32.totalorder %s13_s14, 4   ;;  %s485_s13 = smov %s487_s15 }
  0x92   :  { %12 = sbr.rel (!%p10_p5) target bundleno = 2 (0x2), region = 68 }

</bundles_post_ra>
